<compile_context>
chip_gen: v5e
topology: v5e:2x2
jax: 0.10.0
libtpu: 0.0.40
codegen_flags: <defaults>
</compile_context>

<pallas_src>
import functools

import jax
import jax.numpy as jnp
from jax.experimental import pallas as pl
from jax.experimental.pallas import tpu as pltpu

_LANE = 128
_SUBLANE = 8
_NEG_PAD = -1e30  # finite in f32; exp(-1e30 / T) == 0 exactly


def _round_up(x, m):
    return ((x + m - 1) // m) * m


def _kd_loss_kernel(x_ref, y_ref, t_ref, part_ref, *, inv_t, scale_kl, scale_bce):
    x = x_ref[...].astype(jnp.float32)   # student logits  (TN, Cp)
    y = y_ref[...].astype(jnp.float32)   # BCE targets     (TN, Cp)
    t = t_ref[...].astype(jnp.float32)   # teacher logits  (TN, Cp)

    # ---- student log_softmax(x / T), row-wise (lane axis) ----
    xs = x * inv_t
    xs = xs - jnp.max(xs, axis=1, keepdims=True)
    log_zx = jnp.log(jnp.sum(jnp.exp(xs), axis=1, keepdims=True))
    log_q = xs - log_zx

    # ---- teacher softmax(t / T) and its log ----
    ts = t * inv_t
    ts = ts - jnp.max(ts, axis=1, keepdims=True)
    te = jnp.exp(ts)
    zt = jnp.sum(te, axis=1, keepdims=True)
    # (TN,1) reciprocal + broadcast multiply instead of a (TN,C) divide.
    p = te * pl.reciprocal(zt, approx=False)
    log_p = ts - jnp.log(zt)

    # ---- fused elementwise loss; scales folded in as compile-time constants ----
    kl_elem = p * (log_p - log_q)
    bce_elem = jnp.maximum(x, 0.0) - x * y + jnp.log1p(jnp.exp(-jnp.abs(x)))
    fused = scale_kl * kl_elem + scale_bce * bce_elem

    # One lane-axis XLU reduction pass, then a cheap (TN,1) sublane reduce.
    row_sums = jnp.sum(fused, axis=1, keepdims=True)
    tile_sum = jnp.sum(row_sums)

    # Lane-dense partial-sum slab; wrapper reads [:, 0, 0].
    part_ref[...] = jnp.broadcast_to(tile_sum, part_ref.shape).astype(jnp.float32)


def kd_loss(outputs, labels, teacher_outputs, *, alpha, temperature,
            target_block_elems=256 * 1024):
    N, C = outputs.shape
    T = float(temperature)
    alpha = float(alpha)

    # Lane-dense class axis.
    c_pad = _round_up(C, _LANE)

    # Row tile: multiple of 8 sublanes, sized so each input block is ~<= 1 MiB
    # (3 inputs x 2 pipeline buffers -> a few MiB on every TPU generation).
    tn = max(_SUBLANE, (target_block_elems // c_pad) // _SUBLANE * _SUBLANE)
    if N <= tn:
        tn = _round_up(N, _SUBLANE)
        n_pad = tn
    else:
        n_pad = _round_up(N, tn)
    grid = n_pad // tn
    # TODO(synk): for very large C (LM vocab scale) add a second grid axis over C
    # with online-softmax style running max/sum instead of padding a whole row.

    if n_pad != N or c_pad != C:
        pad = ((0, n_pad - N), (0, c_pad - C))
        x = jnp.pad(outputs.astype(jnp.float32), pad, constant_values=_NEG_PAD)
        t = jnp.pad(teacher_outputs.astype(jnp.float32), pad, constant_values=_NEG_PAD)
        y = jnp.pad(labels.astype(jnp.float32), pad, constant_values=0.0)
    else:
        x, y, t = outputs, labels, teacher_outputs

    kernel = functools.partial(
        _kd_loss_kernel,
        inv_t=1.0 / T,
        scale_kl=alpha * T * T / N,          # 'batchmean' over the ORIGINAL N
        scale_bce=(1.0 - alpha) / (N * C),   # mean over the ORIGINAL N*C
    )

    partials = pl.pallas_call(
        kernel,
        out_shape=jax.ShapeDtypeStruct((grid, _SUBLANE, _LANE), jnp.float32),
        grid=(grid,),
        in_specs=[pl.BlockSpec((tn, c_pad), lambda i: (i, 0))] * 3,
        out_specs=pl.BlockSpec((1, _SUBLANE, _LANE), lambda i: (i, 0, 0)),
        compiler_params=pltpu.CompilerParams(
            dimension_semantics=("parallel",),
            vmem_limit_bytes=32 * 1024 * 1024,
        ),
    )(x, y, t)

    return jnp.sum(partials[:, 0, 0])


def _kd_loss_ref(outputs, labels, teacher_outputs, *, alpha, temperature):
    # Pure-JAX reference (mirrors PyTorch semantics) for a sanity check.
    T = temperature
    log_q = jax.nn.log_softmax(outputs / T, axis=1)
    p = jax.nn.softmax(teacher_outputs / T, axis=1)
    kl = jnp.sum(p * (jnp.log(p) - log_q)) / outputs.shape[0]
    x, y = outputs, labels
    bce = jnp.mean(jnp.maximum(x, 0.0) - x * y + jnp.log1p(jnp.exp(-jnp.abs(x))))
    return kl * (alpha * T * T) + bce * (1.0 - alpha)


if __name__ == "__main__":
    alpha = 0.9
    temperature = 4.0

    # Small case (N=8, C=32): single grid step, exercises lane padding 32->128.
    N, C = 8, 32
    key = jax.random.PRNGKey(0)
    k1, k2, k3 = jax.random.split(key, 3)
    outputs = jax.random.normal(k1, (N, C), dtype=jnp.float32)
    teacher_outputs = jax.random.normal(k2, (N, C), dtype=jnp.float32)
    labels = jax.random.uniform(k3, (N, C), dtype=jnp.float32)  # soft targets in [0,1]

    loss = kd_loss(outputs, labels, teacher_outputs, alpha=alpha, temperature=temperature)
    loss = jax.block_until_ready(loss)
    ref = _kd_loss_ref(outputs, labels, teacher_outputs, alpha=alpha, temperature=temperature)
    assert jnp.allclose(loss, ref, rtol=1e-5, atol=1e-5), (loss, ref)

    # Non-aligned, multi-tile case: exercises row/class padding, the batched
    # grid, and the parallel per-tile partial-sum path (small tile forced).
    N2, C2 = 300, 200
    kk1, kk2, kk3 = jax.random.split(jax.random.PRNGKey(1), 3)
    out2 = jax.random.normal(kk1, (N2, C2), dtype=jnp.float32)
    tea2 = jax.random.normal(kk2, (N2, C2), dtype=jnp.float32)
    lab2 = jax.random.uniform(kk3, (N2, C2), dtype=jnp.float32)
    loss2 = kd_loss(out2, lab2, tea2, alpha=alpha, temperature=temperature,
                    target_block_elems=8 * 256)  # force tn=8 -> 38 grid steps
    loss2 = jax.block_until_ready(loss2)
    ref2 = _kd_loss_ref(out2, lab2, tea2, alpha=alpha, temperature=temperature)
    assert jnp.allclose(loss2, ref2, rtol=1e-4, atol=1e-5), (loss2, ref2)

    print("KERNEL_OK")
</pallas_src>

<mosaic_0001>
module attributes {stable_mosaic.version = 11 : i64} {
  func.func @_kd_loss_kernel(%arg0: i32, %arg1: memref<8x128xf32, #tpu.memory_space<vmem>>, %arg2: memref<8x128xf32, #tpu.memory_space<vmem>>, %arg3: memref<8x128xf32, #tpu.memory_space<vmem>>, %arg4: memref<1x8x128xf32, #tpu.memory_space<vmem>>) attributes {dimension_semantics = [#tpu.dimension_semantics<parallel>], iteration_bounds = array<i64: 1>, scalar_prefetch = 0 : i64, scratch_operands = 0 : i64, tpu.core_type = #tpu.core_type<tc>, window_params = [{transform_indices = @transform_0, window_bounds = array<i64: 8, 128>}, {transform_indices = @transform_1, window_bounds = array<i64: 8, 128>}, {transform_indices = @transform_2, window_bounds = array<i64: 8, 128>}, {transform_indices = @transform_3, window_bounds = array<i64: 1, 8, 128>}]} {
    %c0 = arith.constant 0 : index
    %c0_0 = arith.constant 0 : index
    %0 = vector.load %arg1[%c0, %c0_0] : memref<8x128xf32, #tpu.memory_space<vmem>>, vector<8x128xf32>
    %c0_1 = arith.constant 0 : index
    %c0_2 = arith.constant 0 : index
    %1 = vector.load %arg2[%c0_1, %c0_2] : memref<8x128xf32, #tpu.memory_space<vmem>>, vector<8x128xf32>
    %c0_3 = arith.constant 0 : index
    %c0_4 = arith.constant 0 : index
    %2 = vector.load %arg3[%c0_3, %c0_4] : memref<8x128xf32, #tpu.memory_space<vmem>>, vector<8x128xf32>
    %cst = arith.constant 2.500000e-01 : f32
    %3 = vector.broadcast %cst : f32 to vector<8x128xf32>
    %4 = arith.mulf %0, %3 : vector<8x128xf32>
    %cst_5 = arith.constant dense<0xFF800000> : vector<8xf32>
    %5 = vector.multi_reduction <maximumf>, %4, %cst_5 [1] : vector<8x128xf32> to vector<8xf32>
    %6 = vector.shape_cast %5 : vector<8xf32> to vector<8x1xf32>
    %7 = vector.broadcast %6 : vector<8x1xf32> to vector<8x128xf32>
    %8 = arith.subf %4, %7 : vector<8x128xf32>
    %9 = math.exp %8 : vector<8x128xf32>
    %cst_6 = arith.constant dense<0.000000e+00> : vector<8xf32>
    %10 = vector.multi_reduction <add>, %9, %cst_6 [1] : vector<8x128xf32> to vector<8xf32>
    %11 = vector.shape_cast %10 : vector<8xf32> to vector<8x1xf32>
    %12 = math.log %11 : vector<8x1xf32>
    %13 = vector.broadcast %12 : vector<8x1xf32> to vector<8x128xf32>
    %14 = arith.subf %8, %13 : vector<8x128xf32>
    %cst_7 = arith.constant 2.500000e-01 : f32
    %15 = vector.broadcast %cst_7 : f32 to vector<8x128xf32>
    %16 = arith.mulf %2, %15 : vector<8x128xf32>
    %cst_8 = arith.constant dense<0xFF800000> : vector<8xf32>
    %17 = vector.multi_reduction <maximumf>, %16, %cst_8 [1] : vector<8x128xf32> to vector<8xf32>
    %18 = vector.shape_cast %17 : vector<8xf32> to vector<8x1xf32>
    %19 = vector.broadcast %18 : vector<8x1xf32> to vector<8x128xf32>
    %20 = arith.subf %16, %19 : vector<8x128xf32>
    %21 = math.exp %20 : vector<8x128xf32>
    %cst_9 = arith.constant dense<0.000000e+00> : vector<8xf32>
    %22 = vector.multi_reduction <add>, %21, %cst_9 [1] : vector<8x128xf32> to vector<8xf32>
    %23 = vector.shape_cast %22 : vector<8xf32> to vector<8x1xf32>
    %24 = tpu.reciprocal %23 : vector<8x1xf32> -> vector<8x1xf32>
    %25 = vector.broadcast %24 : vector<8x1xf32> to vector<8x128xf32>
    %26 = arith.mulf %21, %25 : vector<8x128xf32>
    %27 = math.log %23 : vector<8x1xf32>
    %28 = vector.broadcast %27 : vector<8x1xf32> to vector<8x128xf32>
    %29 = arith.subf %20, %28 : vector<8x128xf32>
    %30 = arith.subf %29, %14 : vector<8x128xf32>
    %31 = arith.mulf %26, %30 : vector<8x128xf32>
    %cst_10 = arith.constant 0.000000e+00 : f32
    %32 = vector.broadcast %cst_10 : f32 to vector<8x128xf32>
    %33 = arith.maximumf %0, %32 : vector<8x128xf32>
    %34 = arith.mulf %0, %1 : vector<8x128xf32>
    %35 = arith.subf %33, %34 : vector<8x128xf32>
    %36 = math.absf %0 : vector<8x128xf32>
    %cst_11 = arith.constant 0.000000e+00 : f32
    %37 = vector.broadcast %cst_11 : f32 to vector<8x128xf32>
    %38 = arith.subf %37, %36 : vector<8x128xf32>
    %39 = math.exp %38 : vector<8x128xf32>
    %40 = math.log1p %39 : vector<8x128xf32>
    %41 = arith.addf %35, %40 : vector<8x128xf32>
    %cst_12 = arith.constant 1.800000e+00 : f32
    %42 = vector.broadcast %cst_12 : f32 to vector<8x128xf32>
    %43 = arith.mulf %42, %31 : vector<8x128xf32>
    %cst_13 = arith.constant 3.906250e-04 : f32
    %44 = vector.broadcast %cst_13 : f32 to vector<8x128xf32>
    %45 = arith.mulf %44, %41 : vector<8x128xf32>
    %46 = arith.addf %43, %45 : vector<8x128xf32>
    %cst_14 = arith.constant dense<0.000000e+00> : vector<8xf32>
    %47 = vector.multi_reduction <add>, %46, %cst_14 [1] : vector<8x128xf32> to vector<8xf32>
    %48 = vector.shape_cast %47 : vector<8xf32> to vector<8x1xf32>
    %49 = vector.shape_cast %48 : vector<8x1xf32> to vector<1x8x1xf32>
    %cst_15 = arith.constant dense<0.000000e+00> : vector<1xf32>
    %50 = vector.multi_reduction <add>, %49, %cst_15 [1, 2] : vector<1x8x1xf32> to vector<1xf32>
    %51 = vector.shape_cast %50 : vector<1xf32> to vector<1x1x1xf32>
    %52 = vector.extract %51[0, 0, 0] : f32 from vector<1x1x1xf32>
    %53 = vector.broadcast %52 : f32 to vector<1x8x128xf32>
    %c0_16 = arith.constant 0 : index
    %c0_17 = arith.constant 0 : index
    %c0_18 = arith.constant 0 : index
    %54 = vector.load %arg4[%c0_16, %c0_17, %c0_18] : memref<1x8x128xf32, #tpu.memory_space<vmem>>, vector<1x8x128xf32>
    tpu.vector_store %arg4[%c0_16, %c0_17, %c0_18], %53 {strides = array<i32>} : memref<1x8x128xf32, #tpu.memory_space<vmem>>, vector<1x8x128xf32>,
    return
  }
  func.func @transform_0(%arg0: i32) -> (i32, i32) {
    %c0_i32 = arith.constant 0 : i32
    %c0_i32_0 = arith.constant 0 : i32
    return %arg0, %c0_i32 : i32, i32
  }
  func.func @transform_1(%arg0: i32) -> (i32, i32) {
    %c0_i32 = arith.constant 0 : i32
    %c0_i32_0 = arith.constant 0 : i32
    return %arg0, %c0_i32 : i32, i32
  }
  func.func @transform_2(%arg0: i32) -> (i32, i32) {
    %c0_i32 = arith.constant 0 : i32
    %c0_i32_0 = arith.constant 0 : i32
    return %arg0, %c0_i32 : i32, i32
  }
  func.func @transform_3(%arg0: i32) -> (i32, i32, i32) {
    %c0_i32 = arith.constant 0 : i32
    %c0_i32_0 = arith.constant 0 : i32
    %c0_i32_1 = arith.constant 0 : i32
    return %arg0, %c0_i32, %c0_i32_0 : i32, i32, i32
  }
}

</mosaic_0001>

<bundles_post_ra>
// kernel: tpu_custom_call.1
= control target key start
LH: loop header
LB: loop body
LE: loop exit
PB: predicated region body
PF: predicated region fallthrough
CT: control target
= control target key end

     0   :  { %8 = vsyncpa [#allocation3], 0  ;;  %s309_s0 = inlined_call_operand.hbm [shape: f32[8,128], index: 0, kind: input, shape index: {}]   ;;  %s310_s1 = inlined_call_operand.hbm [shape: f32[8,128], index: 1, kind: input, shape index: {}]   ;;  %s311_s2 = inlined_call_operand.hbm [shape: f32[8,128], index: 2, kind: input, shape index: {}]   ;;  %s312_s3 = inlined_call_operand.hbm [shape: f32[1,8,128], index: 3, kind: output, shape index: {}]  }
   0x1   :  { %9 = vsyncpa [#allocation6], 0  ;;  %s27_s14 = sshll.u32 %s310_s1, 4  ;;  %s28_s14 = int_to_ptr.hbm [resolvable:$true] %s27_s14 }
   0x2   :  { %10 = vsyncpa [#allocation4], 0  ;;  %s273_s15 = smov [#allocation5]   ;;  %s16_s19 = sshll.u32 %s309_s0, 4  ;;  %s17_s19 = int_to_ptr.hbm [resolvable:$true] %s16_s19 }
   0x3   :  { %s29_s16 = sshll.u32 %s273_s15, 4  ;;  %s274_s20 = smov [#allocation2]   ;;  %s30_s16 = int_to_ptr.vmem [resolvable:$true] %s29_s16 }
   0x4   :  { %32 = dma.hbm_to_vmem [thread:$0]  %s28_s14, 128, %s30_s16, [#allocation6]  }
   0x5   :  { %s18_s21 = sshll.u32 %s274_s20, 4  ;;  %s38_s24 = sshll.u32 %s311_s2, 4  ;;  %s19_s21 = int_to_ptr.vmem [resolvable:$true] %s18_s21  ;;  %s39_s24 = int_to_ptr.hbm [resolvable:$true] %s38_s24 }
   0x6   :  { %21 = dma.hbm_to_vmem [thread:$0]  %s17_s19, 128, %s19_s21, [#allocation3]  }
   0x7   :  { %s275_s1 = smov [#allocation7]  }
   0x8   :  { %s40_s25 = sshll.u32 %s275_s1, 4  ;;  %s41_s25 = int_to_ptr.vmem [resolvable:$true] %s40_s25 }
   0x9   :  { %43 = dma.hbm_to_vmem [thread:$0]  %s39_s24, 128, %s41_s25, [#allocation6]  }
   0xa   :  { %267 = dma.done.wait [#allocation3], 128  }
   0xb   :  { %268 = vsyncadd [#allocation3], 4294967168 }
   0xc   :  { %269 = dma.done.wait [#allocation6], 256  }
   0xd   :  { %270 = vsyncadd [#allocation6], 4294967040  ;;  %v58_v0 = vld [vmem:[#allocation7] sm:$0xff]  ;;  %v56_v2 = vld [vmem:[#allocation2] sm:$0xff]  ;;  %vm120_vm5 = vcmask 7168   ;;  %s276_s0 = smov [#allocation8]  }
   0xe   :  { %v70_v1 = vmul.f32 0.25, %v58_v0  ;;  %v59_v3 = vmul.f32 0.25, %v56_v2  ;;  %v101_v12 = vand.u32 2147483647, %v56_v2  ;;  %v57_v20 = vld [vmem:[#allocation5] sm:$0xff]  ;;  %v98_v27 = vmax.f32 %v56_v2, 0.0 }
   0xf   :  { %v99_v28 = vmul.f32 %v57_v20, %v56_v2  ;;  %s138_s2 = sshll.u32 %s276_s0, 4  ;;  %s140_s28 = sshll.u32 %s312_s3, 4  ;;  %s139_s2 = int_to_ptr.vmem [resolvable:$true] %s138_s2  ;;  %s141_s28 = int_to_ptr.hbm [resolvable:$true] %s140_s28 }
  0x10   :  { %71 = vmax.xlane.f32.xlu0 %v70_v1  ;;  %v102_v13 = vsub.f32 0.0, %v101_v12 }
  0x11   :  { %v100_v37 = vsub.f32 %v98_v27, %v99_v28 }
  0x12   :  { %v103_v14 = vmul.f32 1.442695, %v102_v13 }
  0x18   :  { %60 = vmax.xlane.f32.xlu0 %v59_v3 }
  0x83   :  { %v72_v4 = vpop.xlane.xlu0 %71 }
  0x84   :  { %v73_v5 = vsub.f32 %v70_v1, %v72_v4 }
  0x86   :  { %v74_v6 = vmul.f32 1.442695, %v73_v5 }
  0x88   :  { %157 = vpow2.f32 %v74_v6 }
  0x8b   :  { %v61_v7 = vpop.xlane.xlu0 %60 }
  0x8c   :  { %v62_v8 = vsub.f32 %v59_v3, %v61_v7 }
  0x8e   :  { %v158_v9 = vpop.eup %157  ;;  %v63_v10 = vmul.f32 1.442695, %v62_v8 }
  0x8f   :  { %76 = vadd.xlane.f32.xlu1 %v158_v9 }
  0x90   :  { %159 = vpow2.f32 %v63_v10 }
  0x91   :  { %161 = vpow2.f32 %v103_v14 }
  0x96   :  { %v160_v11 = vpop.eup %159 }
  0x97   :  { %65 = vadd.xlane.f32.xlu1 %v160_v11  ;;  %v162_v15 = vpop.eup %161 }
  0x98   :  { %v105_v16 = vadd.f32 1.0, %v162_v15  ;;  %v108_v18 = vmul.f32 -0.5, %v162_v15  ;;  %v111_v25 = vand.u32 2147483647, %v162_v15 }
  0x9a   :  { %v109_v21 = vadd.f32 1.0, %v108_v18  ;;  %vm112_vm1 = vcmp.lt.f32.partialorder %v111_v25, 0.0004427343 }
  0x9c   :  { %v110_v32 = vmul.f32 %v162_v15, %v109_v21 }
 0x102   :  { %v77_v17 = vpop.xlane.xlu1 %76 }
 0x103   :  { %163 = vrcp.f32 %v77_v17  ;;  %v89_v30 = vand.u32 2147483648, %v77_v17  ;;  %v87_v34 = vand.u32 2147483647, %v77_v17  ;;  %vm83_vm2 = vweird.f32 %v77_v17 }
 0x104   :  { %165 = vlog2.f32 %v105_v16 }
 0x105   :  { %167 = vlog2.f32 %v77_v17  ;;  %v90_v39 = vor.u32 1.1754944e-38, %v89_v30  ;;  %vm88_vm4 = vcmp.eq.f32.partialorder %v87_v34, 8.507059e+37 }
 0x109   :  { %v164_v19 = vpop.eup %163 }
 0x10a   :  { %v166_v22 = vpop.eup %165  ;;  %v79_v23 = vmul.f32 %v164_v19, %v77_v17  ;;  %v66_v24 = vpop.xlane.xlu1 %65  ;;  %vm84_vm0 = vweird.f32 %v164_v19 }
 0x10b   :  { %169 = vlog2.f32 %v66_v24  ;;  %v168_v29 = vpop.eup %167  ;;  %v107_v31 = vmul.f32 0.6931472, %v166_v22  ;;  %vm85_vm3 = vmor %vm83_vm2, %vm84_vm0 }
 0x10c   :  { %v80_v26 = vsub.f32 1.0, %v79_v23  ;;  %v94_v36 = vmul.f32 0.6931472, %v168_v29 }
 0x10d   :  { %v113_v40 = vsel %vm112_vm1, %v110_v32, %v107_v31 }
 0x10e   :  { %v81_v33 = vmul.f32 %v164_v19, %v80_v26  ;;  %v95_v45 = vsub.f32 %v73_v5, %v94_v36  ;;  %v114_v46 = vadd.f32 %v113_v40, %v100_v37 }
 0x110   :  { %v82_v35 = vadd.f32 %v164_v19, %v81_v33  ;;  %v116_v50 = vmul.f32 0.000390625, %v114_v46 }
 0x111   :  { %v170_v38 = vpop.eup %169 }
 0x112   :  { %v68_v41 = vmul.f32 0.6931472, %v170_v38  ;;  %v86_v42 = vsel %vm85_vm3, %v164_v19, %v82_v35 }
 0x113   :  { %v91_v43 = vsel %vm88_vm4, %v90_v39, %v86_v42 }
 0x114   :  { %v69_v44 = vsub.f32 %v62_v8, %v68_v41  ;;  %v92_v47 = vmul.f32 %v158_v9, %v91_v43 }
 0x116   :  { %v96_v48 = vsub.f32 %v95_v45, %v69_v44 }
 0x118   :  { %v97_v49 = vmul.f32 %v96_v48, %v92_v47 }
 0x11a   :  { %v115_v51 = vmul.f32 1.8, %v97_v49 }
 0x11c   :  { %v117_v52 = vadd.f32 %v116_v50, %v115_v51 }
 0x11e   :  { %118 = vadd.xlane.f32.xlu2 %v117_v52 }
 0x191   :  { %v119_v53 = vpop.xlane.xlu2 %118 }
 0x192   :  { %v121_v54 = vsel %vm120_vm5, %v119_v53, 0.0 }
 0x193   :  { %122 = vadd.xlane.f32.xlu2 %v121_v54 }
 0x206   :  { %v123_v55 = vpop.xlane.xlu2 %122 }
 0x207   :  { %v124_v56 = vrot.slane %v123_v55, 4 }
 0x209   :  { %v125_v57 = vadd.f32 %v124_v56, %v123_v55 }
 0x20b   :  { %v126_v58 = vrot.slane %v125_v57, 2 }
 0x20d   :  { %v127_v59 = vadd.f32 %v126_v58, %v125_v57 }
 0x20f   :  { %v128_v60 = vrot.slane %v127_v59, 1 }
 0x211   :  { %v129_v61 = vadd.f32 %v128_v60, %v127_v59 }
 0x213   :  { %151 = vpush %v129_v61 }
 0x244   :  { %s152_s29 = spop %151 }
 0x245   :  { %v131_v62 = vstv %s152_s29 }
 0x246   :  { %132 = vst [vmem:[#allocation8] sm:$0xff] %v131_v62 }
 0x247   :  { %143 = dma.vmem_to_hbm [thread:$0]  %s139_s2, 128, %s141_s28, [#allocation4]  }
 0x248   :  { %271 = dma.done.wait [#allocation4], 128  }
 0x249   :  { %272 = vsyncadd [#allocation4], 4294967168 }
 0x24a   :  { %148 = vsyncpa [#allocation3], 1 }
 0x24b   :  { %149 = vsyncpa [#allocation6], 1 }
 0x24c   :  { %150 = vsyncpa [#allocation4], 1 }

</bundles_post_ra>
